<compile_context>
chip_gen: v6e
topology: v6e:2x2x1
jax: 0.10.0
libtpu: 0.0.40
codegen_flags: <defaults>
</compile_context>

<pallas_src>
import functools

import jax
import jax.numpy as jnp
from jax.experimental import pallas as pl
from jax.experimental.pallas import tpu as pltpu


def scaled_linear_kernel(scale_ref, x_ref, w_ref, o_ref, *, mxu_dtype):
    # x_ref: (TB, in_f), w_ref: (TN, in_f), o_ref: (TB, TN), scale_ref: (1,) SMEM
    x = x_ref[...]
    w = w_ref[...]
    w_f32 = w.astype(jnp.float32)
    in_f = w_f32.shape[1]

    # Per-output-row inverse L2 norm, computed directly in (1, TN) lane
    # orientation on the MXU (ones(1, in_f) @ (W*W).T), rsqrt on the EUP.
    # rsqrt(max(||w||^2, eps^2)) == 1 / max(||w||, eps), eps = 1e-12
    # (matches torch.nn.functional.normalize).
    w_sq = w_f32 * w_f32
    norm_sq = jax.lax.dot_general(
        jnp.ones((1, in_f), jnp.float32), w_sq,
        dimension_numbers=(((1,), (1,)), ((), ())),
        preferred_element_type=jnp.float32)                      # (1, TN)
    inv_norm = jax.lax.rsqrt(jnp.maximum(norm_sq, 1e-24))        # (1, TN)
    col_scale = scale_ref[0] * inv_norm                          # (1, TN)

    # Main matmul: x @ W.T, contracting the last dims of both operands so the
    # (out, in) weight tile feeds the MXU without an explicit transpose.
    y = jax.lax.dot_general(
        x.astype(mxu_dtype), w.astype(mxu_dtype),
        dimension_numbers=(((1,), (1,)), ((), ())),
        preferred_element_type=jnp.float32)                      # (TB, TN)

    # Fold scale * inv_norm into one small O(TB*TN) multiply on the output.
    o_ref[...] = (y * col_scale).astype(o_ref.dtype)


def scaled_linear(x, weight, scale, *, block_b=256, block_n=256,
                  use_bf16_matmul=False):
    """x: (B, in_f) f32, weight: (out_f, in_f) f32, scale: (1,) f32.

    block_b/block_n: batch / out_feature tile sizes (clamped to array dims for
    small problems). Set use_bf16_matmul=True on v5e/v6e/v7x to run the MXU in
    bf16 (norm/rescale math stays f32); default keeps full-f32 accuracy.
    """
    B, in_f = x.shape
    out_f, in_f_w = weight.shape
    assert in_f == in_f_w
    assert scale.shape == (1,)

    tb = min(block_b, B)
    tn = min(block_n, out_f)
    grid = (pl.cdiv(B, tb), pl.cdiv(out_f, tn))
    mxu_dtype = jnp.bfloat16 if use_bf16_matmul else jnp.float32
    kernel = functools.partial(scaled_linear_kernel, mxu_dtype=mxu_dtype)

    # TODO(synk): for very large in_features add a K grid axis with a VMEM f32
    # accumulator (pl.when init/finalize) and accumulate the row sum-of-squares
    # alongside the matmul; untiled K is fine for typical layer widths.
    return pl.pallas_call(
        kernel,
        out_shape=jax.ShapeDtypeStruct((B, out_f), x.dtype),
        grid=grid,
        in_specs=[
            pl.BlockSpec(memory_space=pltpu.MemorySpace.SMEM),        # scale
            pl.BlockSpec((tb, in_f), lambda i, j: (i, 0)),            # x tile
            pl.BlockSpec((tn, in_f), lambda i, j: (j, 0)),            # w tile
        ],
        out_specs=pl.BlockSpec((tb, tn), lambda i, j: (i, j)),
        compiler_params=pltpu.CompilerParams(
            dimension_semantics=("parallel", "parallel")),
    )(scale, x, weight)


def xavier_uniform(key, out_features, in_features):
    # Matches torch.nn.init.xavier_uniform_ for a 2-D weight.
    bound = jnp.sqrt(6.0 / (in_features + out_features))
    return jax.random.uniform(
        key, (out_features, in_features), dtype=jnp.float32,
        minval=-bound, maxval=bound)


if __name__ == "__main__":
    key = jax.random.PRNGKey(0)
    k_x, k_w = jax.random.split(key)

    # Small but lane-dense shapes (out/in multiples of 128, batch multiple of 8)
    # so output stores are full-width vst rather than masked partial stores.
    batch = 8
    in_features = 128
    out_features = 128

    x = jax.random.normal(k_x, (batch, in_features), dtype=jnp.float32)
    weight = xavier_uniform(k_w, out_features, in_features)
    scale = jnp.array([10.0], dtype=jnp.float32)

    out = scaled_linear(x, weight, scale)
    out = jax.block_until_ready(out)

    # Pure-JAX reference check (torch semantics: w / max(||w||, 1e-12)).
    w_n = weight / jnp.maximum(
        jnp.linalg.norm(weight, axis=1, keepdims=True), 1e-12)
    ref = scale[0] * (x @ w_n.T)
    assert out.shape == (batch, out_features)
    assert jnp.allclose(out, ref, atol=1e-3, rtol=1e-3)

    print("KERNEL_OK")
</pallas_src>

<mosaic_0001>
module attributes {stable_mosaic.version = 11 : i64} {
  func.func @scaled_linear_kernel(%arg0: i32, %arg1: i32, %arg2: memref<1xf32, #tpu.memory_space<smem>>, %arg3: memref<8x128xf32, #tpu.memory_space<vmem>>, %arg4: memref<128x128xf32, #tpu.memory_space<vmem>>, %arg5: memref<8x128xf32, #tpu.memory_space<vmem>>) attributes {dimension_semantics = [#tpu.dimension_semantics<parallel>, #tpu.dimension_semantics<parallel>], iteration_bounds = array<i64: 1, 1>, scalar_prefetch = 0 : i64, scratch_operands = 0 : i64, tpu.core_type = #tpu.core_type<tc>, window_params = [{transform_indices = @transform_0, window_bounds = array<i64: 1>}, {transform_indices = @transform_1, window_bounds = array<i64: 8, 128>}, {transform_indices = @transform_2, window_bounds = array<i64: 128, 128>}, {transform_indices = @transform_3, window_bounds = array<i64: 8, 128>}]} {
    %c0 = arith.constant 0 : index
    %c0_0 = arith.constant 0 : index
    %0 = vector.load %arg3[%c0, %c0_0] : memref<8x128xf32, #tpu.memory_space<vmem>>, vector<8x128xf32>
    %c0_1 = arith.constant 0 : index
    %c0_2 = arith.constant 0 : index
    %1 = vector.load %arg4[%c0_1, %c0_2] : memref<128x128xf32, #tpu.memory_space<vmem>>, vector<128x128xf32>
    %2 = arith.mulf %1, %1 : vector<128x128xf32>
    %cst = arith.constant 1.000000e+00 : f32
    %3 = vector.broadcast %cst : f32 to vector<1x128xf32>
    %cst_3 = arith.constant dense<0.000000e+00> : vector<1x128xf32>
    %4 = tpu.matmul %3, %2, %cst_3 {dimension_numbers = #tpu.dot_dimension_numbers<[1], [1], [0], [0], [0, 0, 1, 0], [], []>} : vector<1x128xf32>, vector<128x128xf32>, vector<1x128xf32> -> vector<1x128xf32>
    %cst_4 = arith.constant 1.000000e-24 : f32
    %5 = vector.broadcast %cst_4 : f32 to vector<1x128xf32>
    %6 = arith.maximumf %4, %5 : vector<1x128xf32>
    %7 = math.rsqrt %6 : vector<1x128xf32>
    %c0_5 = arith.constant 0 : index
    %8 = memref.load %arg2[%c0_5] : memref<1xf32, #tpu.memory_space<smem>>
    %9 = vector.broadcast %8 : f32 to vector<1x128xf32>
    %10 = arith.mulf %9, %7 : vector<1x128xf32>
    %cst_6 = arith.constant dense<0.000000e+00> : vector<8x128xf32>
    %11 = tpu.matmul %0, %1, %cst_6 {dimension_numbers = #tpu.dot_dimension_numbers<[1], [1], [0], [0], [0, 0, 1, 0], [], []>} : vector<8x128xf32>, vector<128x128xf32>, vector<8x128xf32> -> vector<8x128xf32>
    %12 = vector.broadcast %10 : vector<1x128xf32> to vector<8x128xf32>
    %13 = arith.mulf %11, %12 : vector<8x128xf32>
    %c0_7 = arith.constant 0 : index
    %c0_8 = arith.constant 0 : index
    %14 = vector.load %arg5[%c0_7, %c0_8] : memref<8x128xf32, #tpu.memory_space<vmem>>, vector<8x128xf32>
    tpu.vector_store %arg5[%c0_7, %c0_8], %13 {strides = array<i32>} : memref<8x128xf32, #tpu.memory_space<vmem>>, vector<8x128xf32>,
    return
  }
  func.func @transform_0(%arg0: i32, %arg1: i32) -> i32 {
    %c0_i32 = arith.constant 0 : i32
    %c0_i32_0 = arith.constant 0 : i32
    return %c0_i32 : i32
  }
  func.func @transform_1(%arg0: i32, %arg1: i32) -> (i32, i32) {
    %c0_i32 = arith.constant 0 : i32
    %c0_i32_0 = arith.constant 0 : i32
    return %arg0, %c0_i32 : i32, i32
  }
  func.func @transform_2(%arg0: i32, %arg1: i32) -> (i32, i32) {
    %c0_i32 = arith.constant 0 : i32
    %c0_i32_0 = arith.constant 0 : i32
    return %arg1, %c0_i32 : i32, i32
  }
  func.func @transform_3(%arg0: i32, %arg1: i32) -> (i32, i32) {
    %c0_i32 = arith.constant 0 : i32
    return %arg0, %arg1 : i32, i32
  }
}

</mosaic_0001>

<bundles_post_ra>
// kernel: tpu_custom_call.1
= control target key start
LH: loop header
LB: loop body
LE: loop exit
PB: predicated region body
PF: predicated region fallthrough
CT: control target
= control target key end

     0   :  { %9 = vsyncpa [#allocation4], 0  ;;  %s496_s0 = inlined_call_operand.<no memory space> [shape: f32[1], index: 0, kind: input, shape index: {}]   ;;  %s497_s1 = inlined_call_operand.hbm [shape: f32[8,128], index: 1, kind: input, shape index: {}]   ;;  %s498_s2 = inlined_call_operand.hbm [shape: f32[128,128], index: 2, kind: input, shape index: {}]   ;;  %s499_s3 = inlined_call_operand.hbm [shape: f32[8,128], index: 3, kind: output, shape index: {}]  }
   0x1   :  { %10 = vsyncpa [#allocation7], 0 }
   0x2   :  { %11 = vsyncpa [#allocation5], 0  ;;  %s422_s12 = smov [#allocation3]   ;;  %s423_s14 = smov [#allocation6]  }
   0x3   :  { %s20_s13 = sshll.u32 %s422_s12, 4  ;;  %s29_s15 = sshll.u32 %s423_s14, 4  ;;  %s21_s13 = int_to_ptr.vmem [resolvable:$true] %s20_s13  ;;  %s30_s15 = int_to_ptr.vmem [resolvable:$true] %s29_s15 }
   0x4   :  { %s364_s16 = scalar_lea.vmem %s21_s13, 128  ;;  %p369_p1 = scmp.lt.s32.totalorder %s21_s13, %s21_s13 }
   0x5   :  { %p365_p0 = scmp.ne.s32.totalorder %s21_s13, %s364_s16  ;;  %p370_p2 = scmp.lt.s32.totalorder %s364_s16, %s364_s16 }
   0x7   :  { %p371_p3 = por %p370_p2, %p369_p1 }
   0x9   :  { %p372_p4 = pnand %p371_p3, %p365_p0 }
   0xb   :  { %375 = shalt.err (!%p372_p4)
}
   0xc   :  { %23 = dma.hbm_to_vmem [thread:$0]  %s497_s1, 128, %s21_s13, [#allocation4]  }
   0xd   :  { %s384_s19 = scalar_lea.vmem %s30_s15, 2048  ;;  %p389_p6 = scmp.lt.s32.totalorder %s30_s15, %s30_s15 }
   0xe   :  { %p385_p5 = scmp.ne.s32.totalorder %s30_s15, %s384_s19  ;;  %p390_p7 = scmp.lt.s32.totalorder %s384_s19, %s384_s19 }
  0x10   :  { %p391_p8 = por %p390_p7, %p389_p6 }
  0x12   :  { %p392_p9 = pnand %p391_p8, %p385_p5 }
  0x14   :  { %395 = shalt.err (!%p392_p9)
}
  0x15   :  { %s424_s20 = smov 128   ;;  %s425_s21 = smov 8  }
  0x16   :  { %35 = dma.hbm_to_vmem [thread:$0]  %s498_s2, 2048, %s30_s15, [#allocation7], %s424_s20, %s424_s20, %s425_s21  }
  0x17   :  { %416 = dma.done.wait [#allocation4], 128  }
  0x18   :  { %417 = vsyncadd [#allocation4], 4294967168 }
  0x19   :  { %418 = dma.done.wait [#allocation7], 2048  }
  0x1a   :  { %419 = vsyncadd [#allocation7], 4294965248  ;;  %v426_v0 = vmov 0.0   ;;  %vm427_vm0 = vmmov 0   ;;  %v58_v1 = vld [vmem:[#allocation6 + $0x78] sm:$0xff]  ;;  %v57_v2 = vld [vmem:[#allocation6 + $0x70] sm:$0xff]  ;;  %v220_v40 = vlaneseq  ;;  %v148_v42 = vstv %s496_s0 }
  0x1b   :  { %276 = vmatprep.subr.mxu0 %v426_v0  ;;  %311 = vmatprep.subr.mxu1 %v426_v0  ;;  %v74_v3 = vmul.f32 %v58_v1, %v58_v1  ;;  %v73_v4 = vmul.f32 %v57_v2, %v57_v2  ;;  %v56_v5 = vld [vmem:[#allocation6 + $0x68] sm:$0xff]  ;;  %v55_v7 = vld [vmem:[#allocation6 + $0x60] sm:$0xff]  ;;  %v54_v9 = vld [vmem:[#allocation6 + $0x58] sm:$0xff]  ;;  %v428_v34 = vmov 1.0   ;;  %s429_s24 = smov [#allocation8]  }
  0x1c   :  { %308 = vmatprep.mubr.msk.f32.mxu0 %vm427_vm0, %v426_v0  ;;  %343 = vmatprep.mubr.msk.f32.mxu1 %vm427_vm0, %v426_v0  ;;  %v72_v6 = vmul.f32 %v56_v5, %v56_v5  ;;  %v71_v8 = vmul.f32 %v55_v7, %v55_v7  ;;  %v70_v10 = vmul.f32 %v54_v9, %v54_v9  ;;  %v53_v11 = vld [vmem:[#allocation6 + $0x50] sm:$0xff]  ;;  %v52_v13 = vld [vmem:[#allocation6 + $0x48] sm:$0xff]  ;;  %v51_v15 = vld [vmem:[#allocation6 + $0x40] sm:$0xff]  ;;  %v221_v41 = vshrl.u32 %v220_v40, 7  ;;  %s232_s25 = sshll.u32 %s429_s24, 4  ;;  %s233_s25 = int_to_ptr.vmem [resolvable:$true] %s232_s25 }
  0x1d   :  { %312 = vmatpush3.xpose.msra.mxu1 %v58_v1  ;;  %277 = vmatpush3.xpose.msra.mxu0 %v74_v3  ;;  %v69_v12 = vmul.f32 %v53_v11, %v53_v11  ;;  %v68_v14 = vmul.f32 %v52_v13, %v52_v13  ;;  %v67_v16 = vmul.f32 %v51_v15, %v51_v15  ;;  %v50_v17 = vld [vmem:[#allocation6 + $0x38] sm:$0xff]  ;;  %v49_v19 = vld [vmem:[#allocation6 + $0x30] sm:$0xff]  ;;  %v48_v21 = vld [vmem:[#allocation6 + $0x28] sm:$0xff]  ;;  %s396_s26 = scalar_lea.vmem %s233_s25, 128  ;;  %p401_p11 = scmp.lt.s32.totalorder %s233_s25, %s233_s25 }
  0x1e   :  { %313 = vmatprep.subr.mxu1 %v426_v0  ;;  %278 = vmatprep.subr.mxu0 %v426_v0  ;;  %v66_v18 = vmul.f32 %v50_v17, %v50_v17  ;;  %v65_v20 = vmul.f32 %v49_v19, %v49_v19  ;;  %v64_v22 = vmul.f32 %v48_v21, %v48_v21  ;;  %v47_v23 = vld [vmem:[#allocation6 + $0x20] sm:$0xff]  ;;  %v46_v25 = vld [vmem:[#allocation6 + $0x18] sm:$0xff]  ;;  %v45_v27 = vld [vmem:[#allocation6 + $0x10] sm:$0xff]  ;;  %v222_v43 = vsub.s32 0, %v221_v41  ;;  %p397_p10 = scmp.ne.s32.totalorder %s233_s25, %s396_s26  ;;  %p402_p12 = scmp.lt.s32.totalorder %s396_s26, %s396_s26 }
  0x1f   :  { %v63_v24 = vmul.f32 %v47_v23, %v47_v23  ;;  %v62_v26 = vmul.f32 %v46_v25, %v46_v25  ;;  %v61_v28 = vmul.f32 %v45_v27, %v45_v27  ;;  %v44_v29 = vld [vmem:[#allocation6 + $0x8] sm:$0xff]  ;;  %v43_v31 = vld [vmem:[#allocation6] sm:$0xff]  ;;  %v42_v33 = vld [vmem:[#allocation3] sm:$0xff] }
  0x20   :  { %v60_v30 = vmul.f32 %v44_v29, %v44_v29  ;;  %v59_v32 = vmul.f32 %v43_v31, %v43_v31  ;;  %p403_p13 = por %p402_p12, %p401_p11 }
  0x21   :  { %314 = vmatpush3.xpose.msra.mxu1 %v57_v2  ;;  %279 = vmatpush3.xpose.msra.mxu0 %v73_v4 }
  0x22   :  { %315 = vmatprep.subr.mxu1 %v426_v0  ;;  %280 = vmatprep.subr.mxu0 %v426_v0  ;;  %p404_p0 = pnand %p403_p13, %p397_p10 }
  0x25   :  { %316 = vmatpush3.xpose.msra.mxu1 %v56_v5  ;;  %281 = vmatpush3.xpose.msra.mxu0 %v72_v6 }
  0x26   :  { %317 = vmatprep.subr.mxu1 %v426_v0  ;;  %282 = vmatprep.subr.mxu0 %v426_v0 }
  0x29   :  { %318 = vmatpush3.xpose.msra.mxu1 %v55_v7  ;;  %283 = vmatpush3.xpose.msra.mxu0 %v71_v8 }
  0x2a   :  { %319 = vmatprep.subr.mxu1 %v426_v0  ;;  %284 = vmatprep.subr.mxu0 %v426_v0 }
  0x2d   :  { %320 = vmatpush3.xpose.msra.mxu1 %v54_v9  ;;  %285 = vmatpush3.xpose.msra.mxu0 %v70_v10 }
  0x2e   :  { %321 = vmatprep.subr.mxu1 %v426_v0  ;;  %286 = vmatprep.subr.mxu0 %v426_v0 }
  0x31   :  { %322 = vmatpush3.xpose.msra.mxu1 %v53_v11  ;;  %287 = vmatpush3.xpose.msra.mxu0 %v69_v12 }
  0x32   :  { %323 = vmatprep.subr.mxu1 %v426_v0  ;;  %288 = vmatprep.subr.mxu0 %v426_v0 }
  0x35   :  { %324 = vmatpush3.xpose.msra.mxu1 %v52_v13  ;;  %289 = vmatpush3.xpose.msra.mxu0 %v68_v14 }
  0x36   :  { %325 = vmatprep.subr.mxu1 %v426_v0  ;;  %290 = vmatprep.subr.mxu0 %v426_v0 }
  0x39   :  { %326 = vmatpush3.xpose.msra.mxu1 %v51_v15  ;;  %291 = vmatpush3.xpose.msra.mxu0 %v67_v16 }
  0x3a   :  { %327 = vmatprep.subr.mxu1 %v426_v0  ;;  %292 = vmatprep.subr.mxu0 %v426_v0 }
  0x3d   :  { %328 = vmatpush3.xpose.msra.mxu1 %v50_v17  ;;  %293 = vmatpush3.xpose.msra.mxu0 %v66_v18 }
  0x3e   :  { %329 = vmatprep.subr.mxu1 %v426_v0  ;;  %294 = vmatprep.subr.mxu0 %v426_v0 }
  0x41   :  { %330 = vmatpush3.xpose.msra.mxu1 %v49_v19  ;;  %295 = vmatpush3.xpose.msra.mxu0 %v65_v20 }
  0x42   :  { %331 = vmatprep.subr.mxu1 %v426_v0  ;;  %296 = vmatprep.subr.mxu0 %v426_v0 }
  0x45   :  { %332 = vmatpush3.xpose.msra.mxu1 %v48_v21  ;;  %297 = vmatpush3.xpose.msra.mxu0 %v64_v22 }
  0x46   :  { %333 = vmatprep.subr.mxu1 %v426_v0  ;;  %298 = vmatprep.subr.mxu0 %v426_v0 }
  0x49   :  { %334 = vmatpush3.xpose.msra.mxu1 %v47_v23  ;;  %299 = vmatpush3.xpose.msra.mxu0 %v63_v24 }
  0x4a   :  { %335 = vmatprep.subr.mxu1 %v426_v0  ;;  %300 = vmatprep.subr.mxu0 %v426_v0 }
  0x4d   :  { %336 = vmatpush3.xpose.msra.mxu1 %v46_v25  ;;  %301 = vmatpush3.xpose.msra.mxu0 %v62_v26 }
  0x4e   :  { %337 = vmatprep.subr.mxu1 %v426_v0  ;;  %302 = vmatprep.subr.mxu0 %v426_v0 }
  0x51   :  { %338 = vmatpush3.xpose.msra.mxu1 %v45_v27  ;;  %303 = vmatpush3.xpose.msra.mxu0 %v61_v28 }
  0x52   :  { %339 = vmatprep.subr.mxu1 %v426_v0  ;;  %304 = vmatprep.subr.mxu0 %v426_v0 }
  0x55   :  { %340 = vmatpush3.xpose.msra.mxu1 %v44_v29  ;;  %305 = vmatpush3.xpose.msra.mxu0 %v60_v30 }
  0x56   :  { %341 = vmatprep.subr.mxu1 %v426_v0  ;;  %306 = vmatprep.subr.mxu0 %v426_v0 }
  0x59   :  { %342 = vmatpush3.xpose.msra.mxu1 %v43_v31  ;;  %307 = vmatpush3.xpose.msra.mxu0 %v59_v32 }
  0x5c   :  { %344 = vmatmul.mubr.f32.vlgmr.msra.gmra.mxu1 %v42_v33  ;;  %309 = vmatmul.mubr.f32.vlgmr.msra.gmra.mxu0 %v428_v34 }
 0x11c   :  { %v216_v35 = vpop.f32.mrf.mxu1  ;;  %v141_v36 = vpop.f32.mrf.mxu0 }
 0x11d   :  { %v145_v38 = vmax.f32 %v141_v36, 1e-24 }
 0x11e   :  { %v345_v37 = vpop.f32.mrf.mxu1  ;;  %v310_v39 = vpop.f32.mrf.mxu0 }
 0x11f   :  { %354 = vrsqrt.f32 %v145_v38 }
 0x12c   :  { %v355_v44 = vpop.eup %354 }
 0x12d   :  { %v149_v45 = vmul.f32 %v355_v44, %v148_v42 }
 0x12f   :  { %v223_v46 = vrot.slane %v149_v45, %v222_v43 }
 0x131   :  { %v224_v47 = vmul.f32 %v223_v46, %v216_v35 }
 0x133   :  { %225 = vst [vmem:[#allocation8] sm:$0xff] %v224_v47 }
 0x134   :  { %407 = shalt.err (!%p404_p0)
}
 0x135   :  { %235 = dma.vmem_to_hbm [thread:$0]  %s233_s25, 128, %s499_s3, [#allocation5]  }
 0x136   :  { %420 = dma.done.wait [#allocation5], 128  }
 0x137   :  { %421 = vsyncadd [#allocation5], 4294967168 }
 0x138   :  { %239 = vsyncpa [#allocation4], 1 }
 0x139   :  { %240 = vsyncpa [#allocation7], 1 }
 0x13a   :  { %241 = vsyncpa [#allocation5], 1 }

</bundles_post_ra>
